<compile_context>
chip_gen: v6e
topology: v6e:2x2x1
jax: 0.10.0
libtpu: 0.0.40
codegen_flags: <defaults>
</compile_context>

<pallas_src>
import math

import jax
import jax.numpy as jnp
from jax.experimental import pallas as pl
from jax.experimental.pallas import tpu as pltpu


# -----------------------------------------------------------------------------
# Parameter construction (deterministic, matches PyTorch _build_projections)
# -----------------------------------------------------------------------------
def build_projections(D: int, P: int, theta: float = math.pi / 4) -> jnp.ndarray:
    """P deterministic D x D rotation matrices exp(t * G), t = p / max(P-1, 1).

    G is skew-symmetric with 2x2 blocks [[0, -theta], [theta, 0]], so
    exp(t*G) is block-diagonal with 2x2 rotation blocks of angle t*theta
    (identity on a trailing odd dimension) -- exactly torch.matrix_exp(t * G).
    """
    mats = []
    for p in range(P):
        t = p / max(P - 1, 1)
        ang = t * theta
        c, s = math.cos(ang), math.sin(ang)
        A = jnp.eye(D, dtype=jnp.float32)
        for i in range(0, D - 1, 2):
            A = A.at[i, i].set(c)
            A = A.at[i, i + 1].set(-s)
            A = A.at[i + 1, i].set(s)
            A = A.at[i + 1, i + 1].set(c)
        mats.append(A)
    return jnp.stack(mats, axis=0)  # (P, D, D)


# -----------------------------------------------------------------------------
# Pallas kernel: one fused matmul  out_flat = x @ W
# -----------------------------------------------------------------------------
def atlas_projector_kernel(x_ref, w_ref, o_ref):
    # x_ref: (tn, D)     batch tile
    # w_ref: (D, P*D)    fused, pre-transposed petal matrices (VMEM-resident)
    # o_ref: (tn, P*D)   lane-dense output tile
    o_ref[...] = jnp.dot(
        x_ref[...], w_ref[...], preferred_element_type=jnp.float32
    ).astype(o_ref.dtype)


def _pick_batch_tile(N: int) -> int:
    """Largest batch tile that divides N, is a multiple of 8, and caps VMEM use."""
    for tn in (1024, 512, 256, 128, 64, 32, 16, 8):
        if N >= tn and N % tn == 0:
            return tn
    return N  # small / ragged N: single full-extent block (allowed by BlockSpec)


def atlas_projector_forward(A: jnp.ndarray, x: jnp.ndarray) -> jnp.ndarray:
    """out[p, n, d] = sum_i A[p, d, i] * x[n, i]  ==  einsum('pdi,ni->pnd', A, x)."""
    P, D, _ = A.shape
    N, _ = x.shape

    # Fuse petals: W[i, p*D + d] = A[p, d, i]  -> single (D, P*D) RHS, built once
    # in the wrapper (no per-step XLU transpose inside the kernel).
    W = jnp.transpose(A, (2, 0, 1)).reshape(D, P * D).astype(x.dtype)

    tn = _pick_batch_tile(N)
    grid = (N // tn,) if tn != N else (1,)

    out_flat = pl.pallas_call(
        atlas_projector_kernel,
        out_shape=jax.ShapeDtypeStruct((N, P * D), x.dtype),
        grid_spec=pltpu.PrefetchScalarGridSpec(
            num_scalar_prefetch=0,
            grid=grid,
            in_specs=[
                pl.BlockSpec((tn, D), lambda n: (n, 0)),       # x batch tile
                pl.BlockSpec((D, P * D), lambda n: (0, 0)),    # W resident (never re-DMA'd)
            ],
            out_specs=pl.BlockSpec((tn, P * D), lambda n: (n, 0)),
        ),
        compiler_params=pltpu.CompilerParams(
            dimension_semantics=("parallel",),
        ),
    )(x, W)

    # Cheap wrapper-side relayout of the small result: (N, P*D) -> (P, N, D).
    return jnp.transpose(out_flat.reshape(N, P, D), (1, 0, 2))


# -----------------------------------------------------------------------------
# Main
# -----------------------------------------------------------------------------
if __name__ == "__main__":
    in_dim = 32   # D
    petals = 4    # P  (P*D = 128 -> exactly one lane-dense MXU output pass)
    batch = 8     # N

    A = build_projections(in_dim, petals)                           # (P, D, D)
    key = jax.random.PRNGKey(0)
    x = jax.random.normal(key, (batch, in_dim), dtype=jnp.float32)  # (N, D)

    out = atlas_projector_forward(A, x)
    out = jax.block_until_ready(out)

    # Reference check against plain-JAX einsum (same semantics as torch.einsum).
    ref = jnp.einsum('pdi,ni->pnd', A, x)
    assert out.shape == (petals, batch, in_dim)
    assert jnp.allclose(out, ref, atol=1e-5, rtol=1e-5), "mismatch vs reference"

    print("KERNEL_OK")
</pallas_src>

<mosaic_0001>
module attributes {stable_mosaic.version = 11 : i64} {
  func.func @atlas_projector_kernel(%arg0: i32, %arg1: memref<8x32xf32, #tpu.memory_space<vmem>>, %arg2: memref<32x128xf32, #tpu.memory_space<vmem>>, %arg3: memref<8x128xf32, #tpu.memory_space<vmem>>) attributes {dimension_semantics = [#tpu.dimension_semantics<parallel>], iteration_bounds = array<i64: 1>, scalar_prefetch = 0 : i64, scratch_operands = 0 : i64, tpu.core_type = #tpu.core_type<tc>, window_params = [{transform_indices = @transform_0, window_bounds = array<i64: 8, 32>}, {pipeline_mode = #tpu.pipeline_mode<synchronous>, transform_indices = @transform_1, window_bounds = array<i64: 32, 128>}, {transform_indices = @transform_2, window_bounds = array<i64: 8, 128>}]} {
    %c0 = arith.constant 0 : index
    %c0_0 = arith.constant 0 : index
    %0 = vector.load %arg1[%c0, %c0_0] : memref<8x32xf32, #tpu.memory_space<vmem>>, vector<8x32xf32>
    %c0_1 = arith.constant 0 : index
    %c0_2 = arith.constant 0 : index
    %1 = vector.load %arg2[%c0_1, %c0_2] : memref<32x128xf32, #tpu.memory_space<vmem>>, vector<32x128xf32>
    %cst = arith.constant dense<0.000000e+00> : vector<8x128xf32>
    %2 = tpu.matmul %0, %1, %cst {dimension_numbers = #tpu.dot_dimension_numbers<[1], [0], [0], [1], [0, 0, 1, 1], [], []>} : vector<8x32xf32>, vector<32x128xf32>, vector<8x128xf32> -> vector<8x128xf32>
    %c0_3 = arith.constant 0 : index
    %c0_4 = arith.constant 0 : index
    %3 = vector.load %arg3[%c0_3, %c0_4] : memref<8x128xf32, #tpu.memory_space<vmem>>, vector<8x128xf32>
    tpu.vector_store %arg3[%c0_3, %c0_4], %2 {strides = array<i32>} : memref<8x128xf32, #tpu.memory_space<vmem>>, vector<8x128xf32>,
    return
  }
  func.func @transform_0(%arg0: i32) -> (i32, i32) {
    %c0_i32 = arith.constant 0 : i32
    %c0_i32_0 = arith.constant 0 : i32
    return %arg0, %c0_i32 : i32, i32
  }
  func.func @transform_1(%arg0: i32) -> (i32, i32) {
    %c0_i32 = arith.constant 0 : i32
    %c0_i32_0 = arith.constant 0 : i32
    %c0_i32_1 = arith.constant 0 : i32
    return %c0_i32, %c0_i32_0 : i32, i32
  }
  func.func @transform_2(%arg0: i32) -> (i32, i32) {
    %c0_i32 = arith.constant 0 : i32
    %c0_i32_0 = arith.constant 0 : i32
    return %arg0, %c0_i32 : i32, i32
  }
}

</mosaic_0001>

<bundles_post_ra>
// kernel: tpu_custom_call.1
= control target key start
LH: loop header
LB: loop body
LE: loop exit
PB: predicated region body
PF: predicated region fallthrough
CT: control target
= control target key end

     0   :  { %7 = vsyncpa [#allocation3], 0  ;;  %s255_s0 = inlined_call_operand.hbm [shape: f32[8,32], index: 0, kind: input, shape index: {}]   ;;  %s256_s1 = inlined_call_operand.hbm [shape: f32[32,128], index: 1, kind: input, shape index: {}]   ;;  %s257_s2 = inlined_call_operand.hbm [shape: f32[8,128], index: 2, kind: output, shape index: {}]  }
   0x1   :  { %8 = vsyncpa [#allocation6], 0 }
   0x2   :  { %9 = vsyncpa [#allocation4], 0  ;;  %s224_s9 = smov [#allocation2]   ;;  %s225_s11 = smov [#allocation5]  }
   0x3   :  { %s16_s10 = sshll.u32 %s224_s9, 4  ;;  %s25_s12 = sshll.u32 %s225_s11, 4  ;;  %s17_s10 = int_to_ptr.vmem [resolvable:$true] %s16_s10  ;;  %s26_s12 = int_to_ptr.vmem [resolvable:$true] %s25_s12 }
   0x4   :  { %s166_s13 = scalar_lea.vmem %s17_s10, 128  ;;  %p171_p1 = scmp.lt.s32.totalorder %s17_s10, %s17_s10 }
   0x5   :  { %p167_p0 = scmp.ne.s32.totalorder %s17_s10, %s166_s13  ;;  %p172_p2 = scmp.lt.s32.totalorder %s166_s13, %s166_s13 }
   0x7   :  { %p173_p3 = por %p172_p2, %p171_p1 }
   0x9   :  { %p174_p4 = pnand %p173_p3, %p167_p0 }
   0xb   :  { %177 = shalt.err (!%p174_p4)
}
   0xc   :  { %19 = dma.hbm_to_vmem [thread:$0]  %s255_s0, 128, %s17_s10, [#allocation3]  }
   0xd   :  { %s186_s16 = scalar_lea.vmem %s26_s12, 512  ;;  %p191_p6 = scmp.lt.s32.totalorder %s26_s12, %s26_s12 }
   0xe   :  { %p187_p5 = scmp.ne.s32.totalorder %s26_s12, %s186_s16  ;;  %p192_p7 = scmp.lt.s32.totalorder %s186_s16, %s186_s16 }
  0x10   :  { %p193_p8 = por %p192_p7, %p191_p6 }
  0x12   :  { %p194_p9 = pnand %p193_p8, %p187_p5 }
  0x14   :  { %197 = shalt.err (!%p194_p9)
}
  0x15   :  { %s226_s17 = smov 128   ;;  %s227_s18 = smov 8  }
  0x16   :  { %31 = dma.hbm_to_vmem [thread:$0]  %s256_s1, 512, %s26_s12, [#allocation6], %s226_s17, %s226_s17, %s227_s18  }
  0x17   :  { %218 = dma.done.wait [#allocation3], 128  }
  0x18   :  { %219 = vsyncadd [#allocation3], 4294967168 }
  0x19   :  { %220 = dma.done.wait [#allocation6], 512  }
  0x1a   :  { %221 = vsyncadd [#allocation6], 4294966784  ;;  %v228_v0 = vmov 0.0   ;;  %vm229_vm0 = vmmov 0   ;;  %v42_v1 = vld [vmem:[#allocation5 + $0x18] sm:$0xff]  ;;  %v41_v2 = vld [vmem:[#allocation5 + $0x10] sm:$0xff] }
  0x1b   :  { %140 = vmatprep.subr.mxu0 %v228_v0  ;;  %148 = vmatprep.mubr.msk.f32.mxu0 %vm229_vm0, %v228_v0  ;;  %v40_v3 = vld [vmem:[#allocation5 + $0x8] sm:$0xff]  ;;  %v39_v4 = vld [vmem:[#allocation5] sm:$0xff]  ;;  %v38_v5 = vld [vmem:[#allocation2] sm:$0xff]  ;;  %vm43_vm1 = vcmask 261120   ;;  %s230_s0 = smov [#allocation7]  }
  0x1c   :  { %141 = vmatpush3.msra.mxu0 %v42_v1  ;;  %s124_s1 = sshll.u32 %s230_s0, 4  ;;  %s125_s1 = int_to_ptr.vmem [resolvable:$true] %s124_s1 }
  0x1d   :  { %142 = vmatprep.subr.mxu0 %v228_v0  ;;  %s198_s21 = scalar_lea.vmem %s125_s1, 128  ;;  %p203_p11 = scmp.lt.s32.totalorder %s125_s1, %s125_s1 }
  0x1e   :  { %143 = vmatpush3.msra.mxu0 %v41_v2  ;;  %p199_p10 = scmp.ne.s32.totalorder %s125_s1, %s198_s21  ;;  %p204_p12 = scmp.lt.s32.totalorder %s198_s21, %s198_s21 }
  0x1f   :  { %144 = vmatprep.subr.mxu0 %v228_v0 }
  0x20   :  { %145 = vmatpush3.msra.mxu0 %v40_v3  ;;  %p205_p13 = por %p204_p12, %p203_p11 }
  0x21   :  { %146 = vmatprep.subr.mxu0 %v228_v0 }
  0x22   :  { %147 = vmatpush3.msra.mxu0 %v39_v4  ;;  %p206_p0 = pnand %p205_p13, %p199_p10 }
  0x23   :  { %149 = vmatmul.mubr.msk.f32.vlgmr.msra.gmra.mxu0 %vm43_vm1, %v38_v5 }
  0xe3   :  { %v113_v6 = vpop.f32.mrf.mxu0 }
  0xe4   :  { %117 = vst [vmem:[#allocation7] sm:$0xff] %v113_v6 }
  0xe5   :  { %v150_v7 = vpop.f32.mrf.mxu0 }
  0xe6   :  { %209 = shalt.err (!%p206_p0)
}
  0xe7   :  { %127 = dma.vmem_to_hbm [thread:$0]  %s125_s1, 128, %s257_s2, [#allocation4]  }
  0xe8   :  { %222 = dma.done.wait [#allocation4], 128  }
  0xe9   :  { %223 = vsyncadd [#allocation4], 4294967168 }
  0xea   :  { %131 = vsyncpa [#allocation3], 1 }
  0xeb   :  { %132 = vsyncpa [#allocation6], 1 }
  0xec   :  { %133 = vsyncpa [#allocation4], 1 }

</bundles_post_ra>
